<compile_context>
chip_gen: v7x
topology: tpu7x:2x2x1
jax: 0.10.0
libtpu: 0.0.40
codegen_flags: <defaults>
</compile_context>

<pallas_src>
from collections import OrderedDict

import jax
import jax.numpy as jnp
import numpy as np
from jax import lax
from jax.experimental import pallas as pl
from jax.experimental.pallas import tpu as pltpu


CP = 128          # lane-dense channel padding
ROW_TILE = 1024   # max rows per block for the flattened matmul kernels
                  # (v7x note: with C=128 f32 this is ~0.5 MB/buffer; well
                  #  inside 64 MiB VMEM even double-buffered. For C>=512
                  #  designs cap this at 512 on v7x.)

_PARALLEL = pltpu.CompilerParams(dimension_semantics=("parallel",))


def _round_up(x, m):
    return ((x + m - 1) // m) * m


def _pick_tile(m):
    """Row tile (multiple of 8) and padded row count (multiple of the tile)."""
    tm = min(ROW_TILE, _round_up(m, 8))
    return tm, _round_up(m, tm)


# ----------------------------------------------------------------------------
# Pallas kernels
# ----------------------------------------------------------------------------
def _matmul_bias_kernel(x_ref, w_ref, b_ref, o_ref):
    # (tm, Cin) @ (Cin, CP) + (1, CP)   -- f32 accumulation on the MXU
    o_ref[...] = (
        jnp.dot(x_ref[...], w_ref[...], preferred_element_type=jnp.float32)
        + b_ref[...]
    )


def _lateral_fused_kernel(x_ref, w_ref, b_ref, td_ref, o_ref):
    # Fused lateral 1x1 conv + bias + top-down add (adds stay in f32).
    o_ref[...] = (
        jnp.dot(x_ref[...], w_ref[...], preferred_element_type=jnp.float32)
        + b_ref[...]
        + td_ref[...]
    )


# ----------------------------------------------------------------------------
# Wrappers
# ----------------------------------------------------------------------------
def conv1x1_pallas(x, w, b, compute_dtype):
    """x: (N,H,W,Cin), w: (Cin,CP), b: (CP,) -> (N,H,W,CP) f32."""
    N, H, W, Cin = x.shape
    cp = w.shape[-1]
    M = N * H * W
    tm, Mp = _pick_tile(M)
    xf = x.reshape(M, Cin).astype(compute_dtype)
    if Mp != M:
        xf = jnp.pad(xf, ((0, Mp - M), (0, 0)))
    out = pl.pallas_call(
        _matmul_bias_kernel,
        out_shape=jax.ShapeDtypeStruct((Mp, cp), jnp.float32),
        grid=(Mp // tm,),
        in_specs=[
            pl.BlockSpec((tm, Cin), lambda i: (i, 0)),
            pl.BlockSpec((Cin, cp), lambda i: (0, 0)),
            pl.BlockSpec((1, cp), lambda i: (0, 0)),
        ],
        out_specs=pl.BlockSpec((tm, cp), lambda i: (i, 0)),
        compiler_params=_PARALLEL,
    )(xf, w.astype(compute_dtype), b.reshape(1, cp).astype(jnp.float32))
    return out[:M].reshape(N, H, W, cp)


def conv1x1_lateral_fused(x, w, b, td, compute_dtype):
    """Fused: conv1x1(x) + b + td.  td: (N,H,W,CP) f32 upsampled top-down."""
    N, H, W, Cin = x.shape
    cp = w.shape[-1]
    M = N * H * W
    tm, Mp = _pick_tile(M)
    xf = x.reshape(M, Cin).astype(compute_dtype)
    tdf = td.reshape(M, cp)
    if Mp != M:
        xf = jnp.pad(xf, ((0, Mp - M), (0, 0)))
        tdf = jnp.pad(tdf, ((0, Mp - M), (0, 0)))
    out = pl.pallas_call(
        _lateral_fused_kernel,
        out_shape=jax.ShapeDtypeStruct((Mp, cp), jnp.float32),
        grid=(Mp // tm,),
        in_specs=[
            pl.BlockSpec((tm, Cin), lambda i: (i, 0)),
            pl.BlockSpec((Cin, cp), lambda i: (0, 0)),
            pl.BlockSpec((1, cp), lambda i: (0, 0)),
            pl.BlockSpec((tm, cp), lambda i: (i, 0)),
        ],
        out_specs=pl.BlockSpec((tm, cp), lambda i: (i, 0)),
        compiler_params=_PARALLEL,
    )(xf, w.astype(compute_dtype), b.reshape(1, cp).astype(jnp.float32), tdf)
    return out[:M].reshape(N, H, W, cp)


def conv3x3_pallas(x, w9, b, compute_dtype):
    """x: (N,H,W,CP), w9: (9*CP,CP), b: (CP,) -> (N,H,W,CP) f32, padding=1.

    One grid step per image: the padded image lives in VMEM once (no im2col
    in HBM); each output row is produced by a single K=9*CP MXU matmul over
    the nine in-VMEM shifted taps.
    """
    N, H, W, cp = x.shape
    xp = jnp.pad(x, ((0, 0), (1, 1), (1, 1), (0, 0))).astype(compute_dtype)

    def kernel(x_ref, w_ref, b_ref, o_ref):
        # x_ref: (1, H+2, W+2, cp); w_ref: (9*cp, cp); b_ref: (1, cp)
        for y in range(H):                      # static unrolled row loop
            taps = []
            for dy in range(3):
                row = x_ref[0, y + dy]          # (W+2, cp)
                for dx in range(3):
                    taps.append(row[dx:dx + W, :])
            patch = jnp.concatenate(taps, axis=-1)      # (W, 9*cp)
            o_ref[0, y] = (
                jnp.dot(patch, w_ref[...],
                        preferred_element_type=jnp.float32)
                + b_ref[...]
            )

    return pl.pallas_call(
        kernel,
        out_shape=jax.ShapeDtypeStruct((N, H, W, cp), jnp.float32),
        grid=(N,),
        in_specs=[
            pl.BlockSpec((1, H + 2, W + 2, cp), lambda n: (n, 0, 0, 0)),
            pl.BlockSpec((9 * cp, cp), lambda n: (0, 0)),
            pl.BlockSpec((1, cp), lambda n: (0, 0)),
        ],
        out_specs=pl.BlockSpec((1, H, W, cp), lambda n: (n, 0, 0, 0)),
        compiler_params=_PARALLEL,
    )(xp, w9.astype(compute_dtype), b.reshape(1, cp).astype(jnp.float32))


def upsample_nearest(x, out_h, out_w):
    """F.interpolate(mode='nearest'): src = floor(dst * in / out)."""
    _, h, w, _ = x.shape
    iy = (jnp.arange(out_h) * h) // out_h
    ix = (jnp.arange(out_w) * w) // out_w
    return x[:, iy][:, :, ix]


# ----------------------------------------------------------------------------
# FPN module (float path of QuantizedFeaturePyramidNetwork.forward)
# ----------------------------------------------------------------------------
class QuantizedFeaturePyramidNetworkPallas:
    def __init__(self, in_channels_list, out_channels, key,
                 compute_dtype=jnp.float32):
        self.out_channels = out_channels
        self.compute_dtype = compute_dtype
        self.cp = _round_up(max(out_channels, CP), 128)

        self.inner_w, self.inner_b = [], []   # unpadded params (reference)
        self.layer_w, self.layer_b = [], []
        for cin in in_channels_list:
            key, k1, k2, k3, k4 = jax.random.split(key, 5)
            self.inner_w.append(
                0.1 * jax.random.normal(k1, (cin, out_channels), jnp.float32))
            self.inner_b.append(
                0.1 * jax.random.normal(k2, (out_channels,), jnp.float32))
            self.layer_w.append(
                0.1 * jax.random.normal(
                    k3, (3, 3, out_channels, out_channels), jnp.float32))
            self.layer_b.append(
                0.1 * jax.random.normal(k4, (out_channels,), jnp.float32))

        # Lane-dense (channel-padded) copies used by the Pallas kernels.
        cp = self.cp
        pc = cp - out_channels
        self.inner_w_p = [jnp.pad(w, ((0, 0), (0, pc))) for w in self.inner_w]
        self.inner_b_p = [jnp.pad(b, (0, pc)) for b in self.inner_b]
        self.layer_w_p = [
            jnp.pad(w, ((0, 0), (0, 0), (0, pc), (0, pc))).reshape(9 * cp, cp)
            for w in self.layer_w]
        self.layer_b_p = [jnp.pad(b, (0, pc)) for b in self.layer_b]

    def __call__(self, x):
        names = list(x.keys())
        xs = list(x.values())                  # NHWC, high -> low resolution
        cd = self.compute_dtype

        last_inner = conv1x1_pallas(
            xs[-1], self.inner_w_p[-1], self.inner_b_p[-1], cd)
        results = [conv3x3_pallas(
            last_inner, self.layer_w_p[-1], self.layer_b_p[-1], cd)]

        for idx in range(len(xs) - 2, -1, -1):
            fh, fw = xs[idx].shape[1], xs[idx].shape[2]
            inner_top_down = upsample_nearest(last_inner, fh, fw)
            # fused: lateral 1x1 conv + bias + top-down add
            last_inner = conv1x1_lateral_fused(
                xs[idx], self.inner_w_p[idx], self.inner_b_p[idx],
                inner_top_down, cd)
            results.insert(0, conv3x3_pallas(
                last_inner, self.layer_w_p[idx], self.layer_b_p[idx], cd))

        oc = self.out_channels
        return OrderedDict((n, r[..., :oc]) for n, r in zip(names, results))


# ----------------------------------------------------------------------------
# Pure-JAX reference (cast points match the Pallas path)
# ----------------------------------------------------------------------------
def ref_forward(fpn, feats):
    cd = fpn.compute_dtype

    def conv(x, w, b, pad):
        return lax.conv_general_dilated(
            x.astype(cd), w.astype(cd),
            window_strides=(1, 1), padding=[(pad, pad), (pad, pad)],
            dimension_numbers=("NHWC", "HWIO", "NHWC"),
            precision=lax.Precision.HIGHEST,
            preferred_element_type=jnp.float32) + b

    xs = list(feats.values())
    last_inner = conv(
        xs[-1], fpn.inner_w[-1].reshape(1, 1, *fpn.inner_w[-1].shape),
        fpn.inner_b[-1], 0)
    results = [conv(last_inner, fpn.layer_w[-1], fpn.layer_b[-1], 1)]
    for idx in range(len(xs) - 2, -1, -1):
        lat = conv(
            xs[idx], fpn.inner_w[idx].reshape(1, 1, *fpn.inner_w[idx].shape),
            fpn.inner_b[idx], 0)
        td = upsample_nearest(last_inner, lat.shape[1], lat.shape[2])
        last_inner = lat + td
        results.insert(0, conv(last_inner, fpn.layer_w[idx],
                               fpn.layer_b[idx], 1))
    return OrderedDict(zip(list(feats.keys()), results))


# ----------------------------------------------------------------------------
if __name__ == "__main__":
    key = jax.random.PRNGKey(0)
    batch = 2
    out_channels = 8
    in_channels_list = [4, 8, 16]     # per-level input channels
    spatials = [16, 8, 4]             # per-level HxW

    key, kp = jax.random.split(key)
    feats = OrderedDict()
    for lvl, (cin, s) in enumerate(zip(in_channels_list, spatials)):
        key, kx = jax.random.split(key)
        feats[f"feat{lvl}"] = jax.random.normal(
            kx, (batch, s, s, cin), jnp.float32)   # NHWC

    # f32 path (exact semantics) and bf16-MXU path (v6e/v7x recommendation).
    for compute_dtype, rtol, atol in ((jnp.float32, 1e-4, 1e-4),
                                      (jnp.bfloat16, 2e-2, 2e-2)):
        fpn = QuantizedFeaturePyramidNetworkPallas(
            in_channels_list, out_channels, kp, compute_dtype=compute_dtype)
        out = fpn(feats)
        jax.block_until_ready(list(out.values()))

        ref = ref_forward(fpn, feats)
        for name, s in zip(out.keys(), spatials):
            assert out[name].shape == (batch, s, s, out_channels), (
                name, out[name].shape)
            np.testing.assert_allclose(
                np.asarray(out[name]), np.asarray(ref[name]),
                rtol=rtol, atol=atol)

    print("KERNEL_OK")
</pallas_src>

<mosaic_0001>
module attributes {stable_mosaic.version = 11 : i64} {
  func.func @_matmul_bias_kernel(%arg0: i32, %arg1: memref<32x16xf32, #tpu.memory_space<vmem>>, %arg2: memref<16x128xf32, #tpu.memory_space<vmem>>, %arg3: memref<1x128xf32, #tpu.memory_space<vmem>>, %arg4: memref<32x128xf32, #tpu.memory_space<vmem>>) attributes {dimension_semantics = [#tpu.dimension_semantics<parallel>], iteration_bounds = array<i64: 1>, scalar_prefetch = 0 : i64, scratch_operands = 0 : i64, tpu.core_type = #tpu.core_type<tc>, window_params = [{transform_indices = @transform_0, window_bounds = array<i64: 32, 16>}, {pipeline_mode = #tpu.pipeline_mode<synchronous>, transform_indices = @transform_1, window_bounds = array<i64: 16, 128>}, {pipeline_mode = #tpu.pipeline_mode<synchronous>, transform_indices = @transform_2, window_bounds = array<i64: 1, 128>}, {transform_indices = @transform_3, window_bounds = array<i64: 32, 128>}]} {
    %c0 = arith.constant 0 : index
    %c0_0 = arith.constant 0 : index
    %0 = vector.load %arg1[%c0, %c0_0] : memref<32x16xf32, #tpu.memory_space<vmem>>, vector<32x16xf32>
    %c0_1 = arith.constant 0 : index
    %c0_2 = arith.constant 0 : index
    %1 = vector.load %arg2[%c0_1, %c0_2] : memref<16x128xf32, #tpu.memory_space<vmem>>, vector<16x128xf32>
    %cst = arith.constant dense<0.000000e+00> : vector<32x128xf32>
    %2 = tpu.matmul %0, %1, %cst {dimension_numbers = #tpu.dot_dimension_numbers<[1], [0], [0], [1], [0, 0, 1, 1], [], []>} : vector<32x16xf32>, vector<16x128xf32>, vector<32x128xf32> -> vector<32x128xf32>
    %c0_3 = arith.constant 0 : index
    %c0_4 = arith.constant 0 : index
    %3 = vector.load %arg3[%c0_3, %c0_4] : memref<1x128xf32, #tpu.memory_space<vmem>>, vector<1x128xf32>
    %4 = vector.broadcast %3 : vector<1x128xf32> to vector<32x128xf32>
    %5 = arith.addf %2, %4 : vector<32x128xf32>
    %c0_5 = arith.constant 0 : index
    %c0_6 = arith.constant 0 : index
    %6 = vector.load %arg4[%c0_5, %c0_6] : memref<32x128xf32, #tpu.memory_space<vmem>>, vector<32x128xf32>
    tpu.vector_store %arg4[%c0_5, %c0_6], %5 {strides = array<i32>} : memref<32x128xf32, #tpu.memory_space<vmem>>, vector<32x128xf32>,
    return
  }
  func.func @transform_0(%arg0: i32) -> (i32, i32) {
    %c0_i32 = arith.constant 0 : i32
    %c0_i32_0 = arith.constant 0 : i32
    return %arg0, %c0_i32 : i32, i32
  }
  func.func @transform_1(%arg0: i32) -> (i32, i32) {
    %c0_i32 = arith.constant 0 : i32
    %c0_i32_0 = arith.constant 0 : i32
    %c0_i32_1 = arith.constant 0 : i32
    return %c0_i32, %c0_i32_0 : i32, i32
  }
  func.func @transform_2(%arg0: i32) -> (i32, i32) {
    %c0_i32 = arith.constant 0 : i32
    %c0_i32_0 = arith.constant 0 : i32
    %c0_i32_1 = arith.constant 0 : i32
    return %c0_i32, %c0_i32_0 : i32, i32
  }
  func.func @transform_3(%arg0: i32) -> (i32, i32) {
    %c0_i32 = arith.constant 0 : i32
    %c0_i32_0 = arith.constant 0 : i32
    return %arg0, %c0_i32 : i32, i32
  }
}

</mosaic_0001>

<bundles_post_ra>
// kernel: tpu_custom_call.1
= control target key start
LH: loop header
LB: loop body
LE: loop exit
PB: predicated region body
PF: predicated region fallthrough
CT: control target
= control target key end

     0   :  { %vm28_vm0 = vcmask 130048   ;;  %s256_s0 = inlined_call_operand.vmem [shape: f32[32,16], index: 0, kind: input, shape index: {}]   ;;  %s257_s1 = inlined_call_operand.vmem [shape: f32[16,128], index: 1, kind: input, shape index: {}]   ;;  %s258_s2 = inlined_call_operand.vmem [shape: f32[1,128], index: 2, kind: input, shape index: {}]   ;;  %s259_s3 = inlined_call_operand.hbm [shape: f32[32,128], index: 3, kind: output, shape index: {}]  }
   0x1   :  { %v19_v0 = vld [vmem:[%s257_s1] sm:$0xff]  ;;  %v20_v1 = vld [vmem:[%s257_s1 + $0x8] sm:$0xff]  ;;  %v17_v4 = vld [vmem:[%s256_s0 + $0x10] sm:$0xff] }
   0x2   :  { %v15_v2 = vld [vmem:[%s256_s0] sm:$0xff]  ;;  %v167_v3 = vpack.c.bf16 %v20_v1, %v19_v0  ;;  %164 = vmatprep.mubr.msk.f32.mxu1 %vm28_vm0, %v17_v4 }
   0x3   :  { %161 = vmatprep.mubr.msk.f32.mxu0 %vm28_vm0, %v15_v2 }
   0x4   :  { %8 = vsyncpa [#allocation3], 0  ;;  %168 = vmatprep.subr.bf16.mxu0 %v167_v3  ;;  %171 = vmatprep.subr.bf16.mxu1 %v167_v3  ;;  %v16_v5 = vld [vmem:[%s256_s0 + $0x8] sm:$0xff]  ;;  %v18_v6 = vld [vmem:[%s256_s0 + $0x18] sm:$0xff]  ;;  %s200_s25 = smov [#allocation2]  }
   0x5   :  { %170 = vmatpush3.bf16.msra.mxu0 %v167_v3  ;;  %172 = vmatpush3.bf16.msra.mxu1 %v167_v3  ;;  %v146_v7 = vld [vmem:[%s258_s2] ss:$0 sm:$0xff]  ;;  %s135_s26 = sshll.u32 %s200_s25, 4  ;;  %s136_s26 = int_to_ptr.vmem [resolvable:$true] %s135_s26 }
   0x6   :  { %s176_s0 = scalar_lea.vmem %s136_s26, 512  ;;  %p181_p1 = scmp.lt.s32.totalorder %s136_s26, %s136_s26 }
   0x7   :  { %p177_p0 = scmp.ne.s32.totalorder %s136_s26, %s176_s0  ;;  %p182_p2 = scmp.lt.s32.totalorder %s176_s0, %s176_s0 }
   0x8   :  { %162 = vmatmul.mubr.msk.f32.vlgmr.msra.gmra.mrb[0].mxu0 %vm28_vm0, %v16_v5  ;;  %165 = vmatmul.mubr.msk.f32.vlgmr.msra.gmra.mrb[0].mxu1 %vm28_vm0, %v18_v6 }
   0x9   :  { %p183_p3 = por %p182_p2, %p181_p1 }
   0xb   :  { %p184_p4 = pnand %p183_p3, %p177_p0 }
  0xdb   :  { %v163_v8 = vpop.f32.mrb[0].mxu0  ;;  %v166_v9 = vpop.f32.mrb[0].mxu1 }
  0xdc   :  { %v113_v10 = vadd.f32 %v163_v8, %v146_v7  ;;  %v123_v11 = vadd.f32 %v166_v9, %v146_v7  ;;  %v107_v12 = vpop.f32.mrb[1].mxu0  ;;  %v117_v13 = vpop.f32.mrb[1].mxu1 }
  0xdd   :  { %v108_v14 = vadd.f32 %v146_v7, %v107_v12  ;;  %v118_v15 = vadd.f32 %v146_v7, %v117_v13 }
  0xde   :  { %127 = vst [vmem:[#allocation2 + $0x8] sm:$0xff] %v113_v10  ;;  %129 = vst [vmem:[#allocation2 + $0x18] sm:$0xff] %v123_v11 }
  0xdf   :  { %126 = vst [vmem:[#allocation2] sm:$0xff] %v108_v14  ;;  %128 = vst [vmem:[#allocation2 + $0x10] sm:$0xff] %v118_v15 }
  0xe0   :  { %187 = shalt.err (!%p184_p4)
}
  0xe1   :  { %s188_s28 = scalar_lea.hbm %s259_s3, 512 }
  0xe2   :  { %p189_p5 = scmp.ne.s32.totalorder %s259_s3, %s188_s28  ;;  %p192_p6 = scmp.lt.u32.totalorder %s188_s28, %s259_s3 }
  0xe4   :  { %p194_p7 = pnand %p192_p6, %p189_p5 }
  0xe6   :  { %197 = shalt.err (!%p194_p7)
}
  0xe7   :  { %s201_s6 = smov 128   ;;  %s202_s7 = smov 8  }
  0xe8   :  { %141 = dma.vmem_to_hbm [thread:$0]  %s136_s26, 512, %s259_s3, [#allocation3], %s201_s6, %s201_s6, %s202_s7  }
  0xe9   :  { %198 = dma.done.wait [#allocation3], 512  }
  0xea   :  { %199 = vsyncadd [#allocation3], 4294966784 }
  0xeb   :  { %145 = vsyncpa [#allocation3], 1 }

</bundles_post_ra>
